<compile_context>
chip_gen: v7x
topology: tpu7x:2x2x1
jax: 0.10.0
libtpu: 0.0.40
codegen_flags: <defaults>
</compile_context>

<pallas_src>
import math

import jax
import jax.numpy as jnp
from jax.experimental import pallas as pl
from jax.experimental.pallas import tpu as pltpu

_INV_SQRT2 = 1.0 / math.sqrt(2.0)
_LN_EPS = 1e-5
_LANE = 128


def _round_up(x, m):
    return ((x + m - 1) // m) * m


# --------------------------------------------------------------------------- #
# Kernel
# --------------------------------------------------------------------------- #
def _make_grn_kernel(*, h_pad, fused_skip, approximate_gelu):
    """Builds the GRN kernel, closing over static layout/config constants."""

    def kernel(x_ref, w1_ref, b1_ref, w2_ref, b2_ref, gamma_ref, beta_ref, o_ref):
        x = x_ref[...]                                    # (T, Din) compute dtype

        # fc1 (and, when the skip is a real Linear, the skip fused as extra
        # output columns of the same matmul: W1cat = [W1 | Wskip]).
        hr = jnp.dot(x, w1_ref[...],
                     preferred_element_type=jnp.float32) + b1_ref[...]
        if fused_skip:
            h = hr[:, :h_pad]                             # lane-tile-aligned split
            r = hr[:, h_pad:]                             # residual (f32 accum)
        else:                                             # Identity skip: no matmul
            h = hr
            r = x.astype(jnp.float32)

        # GELU: exact erf by default (matches nn.GELU()); tanh approximation is
        # available as a v5e VALU-relief knob (rides the EUP slot instead).
        if approximate_gelu:
            h = jax.nn.gelu(h, approximate=True)
        else:
            h = 0.5 * h * (1.0 + jax.lax.erf(h * _INV_SQRT2))

        # TODO(synk): dropout is identity in eval mode; training-mode dropout is
        # not implemented in this kernel.

        # fc2 (padded hidden rows of W2 are zero, so padding never leaks).
        y = jnp.dot(h.astype(w2_ref.dtype), w2_ref[...],
                    preferred_element_type=jnp.float32) + b2_ref[...]

        # GLU(cat([y, y], -1)) == y * sigmoid(y)
        g = y * jax.nn.sigmoid(y)

        # residual add + LayerNorm over the true (unpadded) d_out features.
        z = g + r
        mu = jnp.mean(z, axis=-1, keepdims=True)
        c = z - mu
        var = jnp.mean(c * c, axis=-1, keepdims=True)
        zn = c * jax.lax.rsqrt(var + _LN_EPS)
        o_ref[...] = (zn * gamma_ref[...] + beta_ref[...]).astype(o_ref.dtype)

    return kernel


# --------------------------------------------------------------------------- #
# One-time parameter packing (hoisted out of the per-call path)
# --------------------------------------------------------------------------- #
def pack_grn_params(params, *, compute_dtype=jnp.bfloat16, lane_multiple=_LANE):
    """Prepare GRN weights ONCE: pad the hidden dim to a lane multiple, fuse the
    optional Linear skip into fc1's weight as extra output columns, cast matmul
    weights to the MXU compute dtype.  Reuse the result across all forward calls.

    params = (w1, b1, w2, b2, ws, bs, gamma, beta), weights stored [in, out];
    (ws, bs) are None for an Identity skip.
    Returns (w1c, b1p, w2c, b2p, gamma, beta); all static info is recoverable
    from the packed shapes, so the tuple is safe to pass through jax.jit."""
    w1, b1, w2, b2, ws, bs, gamma, beta = params
    d_in, h_dim = w1.shape
    d_out = w2.shape[1]
    fused_skip = ws is not None
    if not fused_skip and d_in != d_out:
        raise ValueError("Identity skip requires input_dim == output_dim")

    # For compute-bound configs on v6e/v7x (2x256x256 MXU) a 256 multiple can
    # be worthwhile; 128 is the right default while HBM-bound.
    h_p = _round_up(h_dim, lane_multiple)
    f32 = jnp.float32

    w1p = jnp.zeros((d_in, h_p), f32).at[:, :h_dim].set(w1.astype(f32))
    b1p = jnp.zeros((1, h_p), f32).at[0, :h_dim].set(b1.reshape(-1).astype(f32))
    if fused_skip:
        w1p = jnp.concatenate([w1p, ws.astype(f32)], axis=1)
        b1p = jnp.concatenate([b1p, bs.reshape(1, -1).astype(f32)], axis=1)
    w2p = jnp.zeros((h_p, d_out), f32).at[:h_dim, :].set(w2.astype(f32))

    return (w1p.astype(compute_dtype),          # [Din, h_p (+ Dout)]   compute dtype
            b1p,                                # [1,   h_p (+ Dout)]   f32
            w2p.astype(compute_dtype),          # [h_p, Dout]           compute dtype
            b2.reshape(1, -1).astype(f32),      # [1, Dout]
            gamma.reshape(1, -1).astype(f32),   # [1, Dout]
            beta.reshape(1, -1).astype(f32))    # [1, Dout]


# --------------------------------------------------------------------------- #
# Tiling / VMEM heuristics (generation-aware)
# --------------------------------------------------------------------------- #
def _default_vmem_limit():
    """~3/4 of per-core VMEM, capped at 96 MiB (v5e/v6e have 128 MiB per core,
    v7x only 64 MiB); conservative 48 MiB fallback if the query fails."""
    cap = None
    try:
        cap = getattr(pltpu.get_tpu_info(), "vmem_capacity_bytes", None)
    except Exception:
        cap = None
    if not cap:
        cap = 64 * 1024 * 1024                 # v7x per-core VMEM (safe everywhere)
    return max(32 * 1024 * 1024, min(int(cap) * 3 // 4, 96 * 1024 * 1024))


def _choose_tile_rows(n_rows, requested, d_in, w1_cols, h_p, d_out,
                      in_itemsize, out_itemsize, wt_itemsize, budget):
    """Largest row tile (multiple of 16 so bf16 (16,128) packing stays dense)
    that fits the VMEM budget and, when the row count allows, leaves >= 4 grid
    steps (>= 2 steps per TensorCore on v7x keeps the BlockSpec double buffer
    actually overlapping DMA with compute on both cores)."""
    row_align = 16
    n_buf = 2                                   # double-buffered streamed tiles

    def vmem_need(t):
        acts = n_buf * t * (d_in * in_itemsize + d_out * out_itemsize)
        temps = t * (w1_cols + 2 * h_p + 5 * d_out) * 4   # hr/h/r/y/g/z/c f32 lives
        wts = (d_in * w1_cols + h_p * d_out) * wt_itemsize  # single-buffered
        vecs = (w1_cols + 3 * d_out) * 4
        return acts + temps + wts + vecs

    t = _round_up(min(max(requested, row_align), max(n_rows, row_align)), row_align)
    while t > row_align and vmem_need(t) > budget:
        t = _round_up(t // 2, row_align)
    while t > row_align and pl.cdiv(n_rows, t) < 4:
        t = _round_up(t // 2, row_align)
    return t


# --------------------------------------------------------------------------- #
# Wrapper
# --------------------------------------------------------------------------- #
def gated_residual_network(x, packed, *, tile_rows=512, approximate_gelu=False,
                           vmem_limit_bytes=None):
    """GRN forward (eval mode).  x: [B, S, Din]; packed: pack_grn_params(...).
    Returns [B, S, Dout] in x.dtype."""
    w1c, b1p, w2c, b2p, gp, bp = packed
    d_in, w1_cols = w1c.shape
    h_p, d_out = w2c.shape
    fused_skip = (w1_cols != h_p)               # identity skip => w1 has only h_p cols
    compute_dtype = w1c.dtype

    b, s, xd = x.shape
    if xd != d_in:
        raise ValueError(f"x feature dim {xd} != packed input dim {d_in}")
    n = b * s

    # x goes to the kernel directly in the MXU compute dtype: no zero-pad pass
    # over the activations, and (for bf16) half the dominant HBM stream.
    # NOTE: with an Identity skip the residual is then bf16-rounded; use
    # compute_dtype=float32 in pack_grn_params if strict f32 parity is needed.
    x2 = x.reshape(n, d_in).astype(compute_dtype)

    in_itemsize = jnp.dtype(compute_dtype).itemsize
    out_itemsize = jnp.dtype(x.dtype).itemsize
    wt_itemsize = in_itemsize

    if vmem_limit_bytes is None:
        vmem_limit_bytes = _default_vmem_limit()
    budget = int(vmem_limit_bytes) * 7 // 8     # headroom for Mosaic scratch

    t_rows = _choose_tile_rows(n, tile_rows, d_in, w1_cols, h_p, d_out,
                               in_itemsize, out_itemsize, wt_itemsize, budget)
    grid = (pl.cdiv(n, t_rows),)                # ragged last block: no row padding

    kernel = _make_grn_kernel(h_pad=h_p, fused_skip=fused_skip,
                              approximate_gelu=approximate_gelu)

    row_spec = pl.BlockSpec((t_rows, d_in), lambda i: (i, 0))
    out_spec = pl.BlockSpec((t_rows, d_out), lambda i: (i, 0))

    def const_spec(shape):
        # Constant-index blocks never need a second pipeline buffer.
        return pl.BlockSpec(shape, lambda i: (0, 0), pipeline_mode=pl.Buffered(1))

    flops = 2 * n * d_in * w1_cols + 2 * n * h_p * d_out
    transcendentals = n * (h_p + d_out)
    bytes_accessed = int(x2.size * in_itemsize + n * d_out * out_itemsize
                         + (w1c.size + w2c.size) * wt_itemsize
                         + (b1p.size + b2p.size + gp.size + bp.size) * 4)

    out2 = pl.pallas_call(
        kernel,
        out_shape=jax.ShapeDtypeStruct((n, d_out), x.dtype),
        grid_spec=pltpu.PrefetchScalarGridSpec(
            num_scalar_prefetch=0,
            grid=grid,
            in_specs=[
                row_spec,                         # x rows (compute dtype)
                const_spec((d_in, w1_cols)),      # [W1 | Wskip]   (compute dtype)
                const_spec((1, w1_cols)),         # [b1 | bskip]   (f32)
                const_spec((h_p, d_out)),         # W2             (compute dtype)
                const_spec((1, d_out)),           # b2
                const_spec((1, d_out)),           # LN gamma
                const_spec((1, d_out)),           # LN beta
            ],
            out_specs=out_spec,
        ),
        compiler_params=pltpu.CompilerParams(
            dimension_semantics=("parallel",),
            vmem_limit_bytes=int(vmem_limit_bytes),
        ),
        cost_estimate=pl.CostEstimate(flops=flops,
                                      transcendentals=transcendentals,
                                      bytes_accessed=bytes_accessed),
    )(x2, w1c, b1p, w2c, b2p, gp, bp)

    return out2.reshape(b, s, d_out)


# --------------------------------------------------------------------------- #
# Synthetic init + pure-JAX reference (for the self-test)
# --------------------------------------------------------------------------- #
def init_params(key, input_dim, hidden_dim, output_dim=None):
    """Matches the PyTorch module's parameter shapes.  Weights are stored
    pre-transposed as [in, out]; (ws, bs) are None when the skip is Identity."""
    if output_dim is None:
        output_dim = input_dim
    k1, k2, k3, k4, k5, k6 = jax.random.split(key, 6)

    def lin(kw, kb, fan_in, fan_out):
        bound = 1.0 / math.sqrt(fan_in)
        w = jax.random.uniform(kw, (fan_in, fan_out), jnp.float32, -bound, bound)
        bvec = jax.random.uniform(kb, (fan_out,), jnp.float32, -bound, bound)
        return w, bvec

    w1, b1 = lin(k1, k2, input_dim, hidden_dim)
    w2, b2 = lin(k3, k4, hidden_dim, output_dim)
    if input_dim != output_dim:
        ws, bs = lin(k5, k6, input_dim, output_dim)
    else:
        ws, bs = None, None                      # nn.Identity skip
    gamma = jnp.ones((output_dim,), jnp.float32)
    beta = jnp.zeros((output_dim,), jnp.float32)
    return (w1, b1, w2, b2, ws, bs, gamma, beta)


def _reference(x, params):
    w1, b1, w2, b2, ws, bs, gamma, beta = params
    h = x @ w1 + b1
    h = 0.5 * h * (1.0 + jax.lax.erf(h * _INV_SQRT2))
    y = h @ w2 + b2
    g = y * jax.nn.sigmoid(y)
    r = x @ ws + bs if ws is not None else x
    z = g + r
    mu = jnp.mean(z, -1, keepdims=True)
    var = jnp.mean((z - mu) ** 2, -1, keepdims=True)
    return (z - mu) * jax.lax.rsqrt(var + _LN_EPS) * gamma + beta


if __name__ == "__main__":
    B, S = 2, 8
    key = jax.random.PRNGKey(0)
    kx1, kx2, kp1, kp2 = jax.random.split(key, 4)

    # Case 1: output_dim == input_dim -> nn.Identity skip (no skip matmul).
    # Case 2: output_dim != input_dim -> nn.Linear skip fused into fc1.
    cases = [
        ("identity-skip", kx1, kp1, 32, 64, None),
        ("linear-skip", kx2, kp2, 32, 64, 48),
    ]

    for name, kx, kp, din, hid, dout in cases:
        x = jax.random.normal(kx, (B, S, din), jnp.float32)
        params = init_params(kp, din, hid, dout)
        ref = _reference(x, params)

        # f32 matmul path: tight check against the pure-JAX reference.
        packed_f32 = pack_grn_params(params, compute_dtype=jnp.float32)
        out = jax.block_until_ready(gated_residual_network(x, packed_f32))
        assert out.shape == ref.shape, name
        assert jnp.allclose(out, ref, atol=1e-4, rtol=1e-4), f"{name}: f32 mismatch"

        # Default bf16 MXU path (f32 accumulation, bf16 x stream), bf16 tolerance.
        packed_bf16 = pack_grn_params(params)
        out_bf = jax.block_until_ready(gated_residual_network(x, packed_bf16))
        assert out_bf.shape == ref.shape, name
        assert jnp.allclose(out_bf, ref, atol=5e-2, rtol=5e-2), f"{name}: bf16 mismatch"

    print("KERNEL_OK")
</pallas_src>

<mosaic_0001>
module attributes {stable_mosaic.version = 11 : i64} {
  func.func @kernel(%arg0: i32, %arg1: memref<16x32xf32, #tpu.memory_space<vmem>>, %arg2: memref<32x128xf32, #tpu.memory_space<vmem>>, %arg3: memref<1x128xf32, #tpu.memory_space<vmem>>, %arg4: memref<128x32xf32, #tpu.memory_space<vmem>>, %arg5: memref<1x32xf32, #tpu.memory_space<vmem>>, %arg6: memref<1x32xf32, #tpu.memory_space<vmem>>, %arg7: memref<1x32xf32, #tpu.memory_space<vmem>>, %arg8: memref<16x32xf32, #tpu.memory_space<vmem>>) attributes {dimension_semantics = [#tpu.dimension_semantics<parallel>], iteration_bounds = array<i64: 1>, scalar_prefetch = 0 : i64, scratch_operands = 0 : i64, tpu.core_type = #tpu.core_type<tc>, window_params = [{transform_indices = @transform_0, window_bounds = array<i64: 16, 32>}, {pipeline_mode = #tpu.pipeline_mode<synchronous>, transform_indices = @transform_1, window_bounds = array<i64: 32, 128>}, {pipeline_mode = #tpu.pipeline_mode<synchronous>, transform_indices = @transform_2, window_bounds = array<i64: 1, 128>}, {pipeline_mode = #tpu.pipeline_mode<synchronous>, transform_indices = @transform_3, window_bounds = array<i64: 128, 32>}, {pipeline_mode = #tpu.pipeline_mode<synchronous>, transform_indices = @transform_4, window_bounds = array<i64: 1, 32>}, {pipeline_mode = #tpu.pipeline_mode<synchronous>, transform_indices = @transform_5, window_bounds = array<i64: 1, 32>}, {pipeline_mode = #tpu.pipeline_mode<synchronous>, transform_indices = @transform_6, window_bounds = array<i64: 1, 32>}, {transform_indices = @transform_7, window_bounds = array<i64: 16, 32>}]} {
    %c0 = arith.constant 0 : index
    %c0_0 = arith.constant 0 : index
    %0 = vector.load %arg1[%c0, %c0_0] : memref<16x32xf32, #tpu.memory_space<vmem>>, vector<16x32xf32>
    %c0_1 = arith.constant 0 : index
    %c0_2 = arith.constant 0 : index
    %1 = vector.load %arg2[%c0_1, %c0_2] : memref<32x128xf32, #tpu.memory_space<vmem>>, vector<32x128xf32>
    %cst = arith.constant dense<0.000000e+00> : vector<16x128xf32>
    %2 = tpu.matmul %0, %1, %cst {dimension_numbers = #tpu.dot_dimension_numbers<[1], [0], [0], [1], [0, 0, 1, 1], [], []>} : vector<16x32xf32>, vector<32x128xf32>, vector<16x128xf32> -> vector<16x128xf32>
    %c0_3 = arith.constant 0 : index
    %c0_4 = arith.constant 0 : index
    %3 = vector.load %arg3[%c0_3, %c0_4] : memref<1x128xf32, #tpu.memory_space<vmem>>, vector<1x128xf32>
    %4 = vector.broadcast %3 : vector<1x128xf32> to vector<16x128xf32>
    %5 = arith.addf %2, %4 : vector<16x128xf32>
    %cst_5 = arith.constant 5.000000e-01 : f32
    %6 = vector.broadcast %cst_5 : f32 to vector<16x128xf32>
    %7 = arith.mulf %6, %5 : vector<16x128xf32>
    %cst_6 = arith.constant 0.707106769 : f32
    %8 = vector.broadcast %cst_6 : f32 to vector<16x128xf32>
    %9 = arith.mulf %5, %8 : vector<16x128xf32>
    %10 = math.erf %9 : vector<16x128xf32>
    %cst_7 = arith.constant 1.000000e+00 : f32
    %11 = vector.broadcast %cst_7 : f32 to vector<16x128xf32>
    %12 = arith.addf %11, %10 : vector<16x128xf32>
    %13 = arith.mulf %7, %12 : vector<16x128xf32>
    %c0_8 = arith.constant 0 : index
    %c0_9 = arith.constant 0 : index
    %14 = vector.load %arg4[%c0_8, %c0_9] : memref<128x32xf32, #tpu.memory_space<vmem>>, vector<128x32xf32>
    %cst_10 = arith.constant dense<0.000000e+00> : vector<16x32xf32>
    %15 = tpu.matmul %13, %14, %cst_10 {dimension_numbers = #tpu.dot_dimension_numbers<[1], [0], [0], [1], [0, 0, 1, 1], [], []>} : vector<16x128xf32>, vector<128x32xf32>, vector<16x32xf32> -> vector<16x32xf32>
    %c0_11 = arith.constant 0 : index
    %c0_12 = arith.constant 0 : index
    %16 = vector.load %arg5[%c0_11, %c0_12] : memref<1x32xf32, #tpu.memory_space<vmem>>, vector<1x32xf32>
    %17 = vector.broadcast %16 : vector<1x32xf32> to vector<16x32xf32>
    %18 = arith.addf %15, %17 : vector<16x32xf32>
    %19 = arith.negf %18 : vector<16x32xf32>
    %20 = math.exp %19 : vector<16x32xf32>
    %cst_13 = arith.constant 1.000000e+00 : f32
    %21 = vector.broadcast %cst_13 : f32 to vector<16x32xf32>
    %22 = arith.addf %21, %20 : vector<16x32xf32>
    %23 = arith.divf %21, %22 : vector<16x32xf32>
    %24 = arith.mulf %18, %23 : vector<16x32xf32>
    %25 = arith.addf %24, %0 : vector<16x32xf32>
    %cst_14 = arith.constant dense<0.000000e+00> : vector<16xf32>
    %26 = vector.multi_reduction <add>, %25, %cst_14 [1] : vector<16x32xf32> to vector<16xf32>
    %27 = vector.shape_cast %26 : vector<16xf32> to vector<16x1xf32>
    %cst_15 = arith.constant 3.200000e+01 : f32
    %28 = vector.broadcast %cst_15 : f32 to vector<16x1xf32>
    %29 = arith.divf %27, %28 : vector<16x1xf32>
    %30 = vector.broadcast %29 : vector<16x1xf32> to vector<16x32xf32>
    %31 = arith.subf %25, %30 : vector<16x32xf32>
    %32 = arith.mulf %31, %31 : vector<16x32xf32>
    %cst_16 = arith.constant dense<0.000000e+00> : vector<16xf32>
    %33 = vector.multi_reduction <add>, %32, %cst_16 [1] : vector<16x32xf32> to vector<16xf32>
    %34 = vector.shape_cast %33 : vector<16xf32> to vector<16x1xf32>
    %cst_17 = arith.constant 3.200000e+01 : f32
    %35 = vector.broadcast %cst_17 : f32 to vector<16x1xf32>
    %36 = arith.divf %34, %35 : vector<16x1xf32>
    %cst_18 = arith.constant 9.99999974E-6 : f32
    %37 = vector.broadcast %cst_18 : f32 to vector<16x1xf32>
    %38 = arith.addf %36, %37 : vector<16x1xf32>
    %39 = math.rsqrt %38 : vector<16x1xf32>
    %40 = vector.broadcast %39 : vector<16x1xf32> to vector<16x32xf32>
    %41 = arith.mulf %31, %40 : vector<16x32xf32>
    %c0_19 = arith.constant 0 : index
    %c0_20 = arith.constant 0 : index
    %42 = vector.load %arg6[%c0_19, %c0_20] : memref<1x32xf32, #tpu.memory_space<vmem>>, vector<1x32xf32>
    %43 = vector.broadcast %42 : vector<1x32xf32> to vector<16x32xf32>
    %44 = arith.mulf %41, %43 : vector<16x32xf32>
    %c0_21 = arith.constant 0 : index
    %c0_22 = arith.constant 0 : index
    %45 = vector.load %arg7[%c0_21, %c0_22] : memref<1x32xf32, #tpu.memory_space<vmem>>, vector<1x32xf32>
    %46 = vector.broadcast %45 : vector<1x32xf32> to vector<16x32xf32>
    %47 = arith.addf %44, %46 : vector<16x32xf32>
    %c0_23 = arith.constant 0 : index
    %c0_24 = arith.constant 0 : index
    %48 = vector.load %arg8[%c0_23, %c0_24] : memref<16x32xf32, #tpu.memory_space<vmem>>, vector<16x32xf32>
    tpu.vector_store %arg8[%c0_23, %c0_24], %47 {strides = array<i32>} : memref<16x32xf32, #tpu.memory_space<vmem>>, vector<16x32xf32>,
    return
  }
  func.func @transform_0(%arg0: i32) -> (i32, i32) {
    %c0_i32 = arith.constant 0 : i32
    %c0_i32_0 = arith.constant 0 : i32
    return %arg0, %c0_i32 : i32, i32
  }
  func.func @transform_1(%arg0: i32) -> (i32, i32) {
    %c0_i32 = arith.constant 0 : i32
    %c0_i32_0 = arith.constant 0 : i32
    %c0_i32_1 = arith.constant 0 : i32
    return %c0_i32, %c0_i32_0 : i32, i32
  }
  func.func @transform_2(%arg0: i32) -> (i32, i32) {
    %c0_i32 = arith.constant 0 : i32
    %c0_i32_0 = arith.constant 0 : i32
    %c0_i32_1 = arith.constant 0 : i32
    return %c0_i32, %c0_i32_0 : i32, i32
  }
  func.func @transform_3(%arg0: i32) -> (i32, i32) {
    %c0_i32 = arith.constant 0 : i32
    %c0_i32_0 = arith.constant 0 : i32
    %c0_i32_1 = arith.constant 0 : i32
    return %c0_i32, %c0_i32_0 : i32, i32
  }
  func.func @transform_4(%arg0: i32) -> (i32, i32) {
    %c0_i32 = arith.constant 0 : i32
    %c0_i32_0 = arith.constant 0 : i32
    %c0_i32_1 = arith.constant 0 : i32
    return %c0_i32, %c0_i32_0 : i32, i32
  }
  func.func @transform_5(%arg0: i32) -> (i32, i32) {
    %c0_i32 = arith.constant 0 : i32
    %c0_i32_0 = arith.constant 0 : i32
    %c0_i32_1 = arith.constant 0 : i32
    return %c0_i32, %c0_i32_0 : i32, i32
  }
  func.func @transform_6(%arg0: i32) -> (i32, i32) {
    %c0_i32 = arith.constant 0 : i32
    %c0_i32_0 = arith.constant 0 : i32
    %c0_i32_1 = arith.constant 0 : i32
    return %c0_i32, %c0_i32_0 : i32, i32
  }
  func.func @transform_7(%arg0: i32) -> (i32, i32) {
    %c0_i32 = arith.constant 0 : i32
    %c0_i32_0 = arith.constant 0 : i32
    return %arg0, %c0_i32 : i32, i32
  }
}

</mosaic_0001>

<bundles_post_ra>
// kernel: tpu_custom_call.1
= control target key start
LH: loop header
LB: loop body
LE: loop exit
PB: predicated region body
PF: predicated region fallthrough
CT: control target
= control target key end

     0   :  { %vm40_vm0 = vcmask 261120   ;;  %s619_s0 = inlined_call_operand.vmem [shape: f32[16,32], index: 0, kind: input, shape index: {}]   ;;  %s620_s1 = inlined_call_operand.vmem [shape: f32[32,128], index: 1, kind: input, shape index: {}]   ;;  %s621_s2 = inlined_call_operand.vmem [shape: f32[1,128], index: 2, kind: input, shape index: {}]   ;;  %s622_s3 = inlined_call_operand.vmem [shape: f32[128,32], index: 3, kind: input, shape index: {}]   ;;  %s623_s4 = inlined_call_operand.vmem [shape: f32[1,32], index: 4, kind: input, shape index: {}]   ;;  %s624_s5 = inlined_call_operand.vmem [shape: f32[1,32], index: 5, kind: input, shape index: {}]   ;;  %s625_s6 = inlined_call_operand.vmem [shape: f32[1,32], index: 6, kind: input, shape index: {}]   ;;  %s626_s7 = inlined_call_operand.hbm [shape: f32[16,32], index: 7, kind: output, shape index: {}]  }
   0x1   :  { %v29_v0 = vld [vmem:[%s620_s1] sm:$0xff]  ;;  %v30_v1 = vld [vmem:[%s620_s1 + $0x8] sm:$0xff]  ;;  %v31_v2 = vld [vmem:[%s620_s1 + $0x10] sm:$0xff] }
   0x2   :  { %v387_v3 = vpack.c.bf16 %v30_v1, %v29_v0  ;;  %v32_v4 = vld [vmem:[%s620_s1 + $0x18] sm:$0xff]  ;;  %v528_v5 = vld [vmem:[%s619_s0] sm:$0xff]  ;;  %v133_v8 = vld [vmem:[%s622_s3 + $0x8] sm:$0xff] }
   0x3   :  { %v391_v6 = vpack.c.bf16 %v32_v4, %v31_v2  ;;  %349 = vmatprep.mubr.msk.f32.mxu0 %vm40_vm0, %v528_v5  ;;  %v132_v7 = vld [vmem:[%s622_s3] sm:$0xff]  ;;  %v134_v9 = vld [vmem:[%s622_s3 + $0x10] sm:$0xff]  ;;  %v135_v11 = vld [vmem:[%s622_s3 + $0x18] sm:$0xff] }
   0x4   :  { %388 = vmatprep.subr.bf16.mxu0 %v387_v3  ;;  %v395_v10 = vpack.c.bf16 %v133_v8, %v132_v7  ;;  %v399_v12 = vpack.c.bf16 %v135_v11, %v134_v9  ;;  %v136_v13 = vld [vmem:[%s622_s3 + $0x20] sm:$0xff]  ;;  %v137_v14 = vld [vmem:[%s622_s3 + $0x28] sm:$0xff] }
   0x5   :  { %390 = vmatpush3.bf16.msra.mxu0 %v387_v3 }
   0x6   :  { %12 = vsyncpa [#allocation3], 0  ;;  %392 = vmatprep.subr.bf16.mxu0 %v391_v6  ;;  %396 = vmatprep.subr.bf16.mxu1 %v395_v10  ;;  %v403_v15 = vpack.c.bf16 %v137_v14, %v136_v13  ;;  %v553_v16 = vld [vmem:[%s619_s0 + $0x8] sm:$0xff]  ;;  %v138_v17 = vld [vmem:[%s622_s3 + $0x30] sm:$0xff]  ;;  %s470_s24 = smov [#allocation2]  }
   0x7   :  { %398 = vmatpush3.bf16.msra.mxu1 %v395_v10  ;;  %v139_v18 = vld [vmem:[%s622_s3 + $0x38] sm:$0xff]  ;;  %v140_v20 = vld [vmem:[%s622_s3 + $0x40] sm:$0xff]  ;;  %v141_v21 = vld [vmem:[%s622_s3 + $0x48] sm:$0xff]  ;;  %s298_s25 = sshll.u32 %s470_s24, 4  ;;  %s299_s25 = int_to_ptr.vmem [resolvable:$true] %s298_s25 }
   0x8   :  { %400 = vmatprep.subr.bf16.mxu1 %v399_v12  ;;  %v407_v19 = vpack.c.bf16 %v139_v18, %v138_v17  ;;  %v411_v22 = vpack.c.bf16 %v141_v21, %v140_v20  ;;  %v142_v23 = vld [vmem:[%s622_s3 + $0x50] sm:$0xff]  ;;  %v143_v24 = vld [vmem:[%s622_s3 + $0x58] sm:$0xff]  ;;  %v144_v26 = vld [vmem:[%s622_s3 + $0x60] sm:$0xff]  ;;  %s446_s26 = scalar_lea.vmem %s299_s25, 256  ;;  %p451_p1 = scmp.lt.s32.totalorder %s299_s25, %s299_s25 }
   0x9   :  { %394 = vmatpush3.bf16.msra.mxu0 %v391_v6  ;;  %v415_v25 = vpack.c.bf16 %v143_v24, %v142_v23  ;;  %v145_v27 = vld [vmem:[%s622_s3 + $0x68] sm:$0xff]  ;;  %v146_v29 = vld [vmem:[%s622_s3 + $0x70] sm:$0xff]  ;;  %v147_v30 = vld [vmem:[%s622_s3 + $0x78] sm:$0xff]  ;;  %p447_p0 = scmp.ne.s32.totalorder %s299_s25, %s446_s26  ;;  %p452_p2 = scmp.lt.s32.totalorder %s446_s26, %s446_s26 }
   0xa   :  { %v419_v28 = vpack.c.bf16 %v145_v27, %v144_v26  ;;  %v423_v31 = vpack.c.bf16 %v147_v30, %v146_v29  ;;  %v309_v32 = vld [vmem:[%s621_s2] ss:$0 sm:$0xff] }
   0xb   :  { %402 = vmatpush3.bf16.msra.mxu1 %v399_v12  ;;  %v312_v47 = vld [vmem:[%s623_s4] ss:$0 sm:$0xff]  ;;  %p453_p3 = por %p452_p2, %p451_p1 }
   0xc   :  { %350 = vmatmul.mubr.msk.f32.vlgmr.msra.gmra.mrb[0].mxu0 %vm40_vm0, %v553_v16  ;;  %404 = vmatprep.subr.bf16.mxu1 %v403_v15  ;;  %v316_v21 = vld [vmem:[%s625_s6] ss:$0 sm:$0xff] }
   0xd   :  { %p454_p4 = pnand %p453_p3, %p447_p0 }
   0xf   :  { %406 = vmatpush3.bf16.msra.mxu1 %v403_v15 }
  0x10   :  { %408 = vmatprep.subr.bf16.mxu1 %v407_v19 }
  0x13   :  { %410 = vmatpush3.bf16.msra.mxu1 %v407_v19  ;;  %v315_v19 = vld [vmem:[%s624_s5] ss:$0 sm:$0xff] }
  0x14   :  { %412 = vmatprep.subr.bf16.mxu1 %v411_v22 }
  0x17   :  { %414 = vmatpush3.bf16.msra.mxu1 %v411_v22 }
  0x18   :  { %416 = vmatprep.subr.bf16.mxu1 %v415_v25 }
  0x1b   :  { %418 = vmatpush3.bf16.msra.mxu1 %v415_v25 }
  0x1c   :  { %420 = vmatprep.subr.bf16.mxu1 %v419_v28 }
  0x1f   :  { %422 = vmatpush3.bf16.msra.mxu1 %v419_v28 }
  0x20   :  { %424 = vmatprep.subr.bf16.mxu1 %v423_v31 }
  0x23   :  { %426 = vmatpush3.bf16.msra.mxu1 %v423_v31 }
  0xdf   :  { %v351_v33 = vpop.f32.mrb[0].mxu0 }
  0xe0   :  { %v119_v34 = vadd.f32 %v351_v33, %v309_v32  ;;  %v113_v35 = vpop.f32.mrb[1].mxu0 }
  0xe1   :  { %v114_v36 = vadd.f32 %v309_v32, %v113_v35 }
  0xe2   :  { %v125_v37 = vmul.f32 0.70710677, %v119_v34  ;;  %v123_v44 = vmul.f32 0.5, %v119_v34 }
  0xe3   :  { %v124_v38 = vmul.f32 0.70710677, %v114_v36  ;;  %v122_v42 = vmul.f32 0.5, %v114_v36 }
  0xe4   :  { %430 = verf.f32 %v125_v37 }
  0xe5   :  { %432 = verf.f32 %v124_v38 }
  0xee   :  { %v431_v39 = vpop.eup %430 }
  0xef   :  { %v433_v40 = vpop.eup %432  ;;  %v129_v41 = vadd.f32 1.0, %v431_v39 }
  0xf0   :  { %v128_v43 = vadd.f32 1.0, %v433_v40 }
  0xf1   :  { %v131_v46 = vmul.f32 %v129_v41, %v123_v44 }
  0xf2   :  { %v130_v45 = vmul.f32 %v128_v43, %v122_v42 }
  0xf4   :  { %384 = vmatprep.mubr.f32.mxu1 %v130_v45 }
  0xf5   :  { %385 = vmatmul.mubr.f32.vlgmr.msra.gmra.mrb[0].mxu1 %v131_v46 }
 0x1c8   :  { %v386_v48 = vpop.f32.mrb[0].mxu1 }
 0x1c9   :  { %v227_v49 = vadd.f32 %v386_v48, %v312_v47  ;;  %v221_v50 = vpop.f32.mrb[1].mxu1 }
 0x1ca   :  { %v222_v51 = vadd.f32 %v312_v47, %v221_v50 }
 0x1cb   :  { %v314_v52 = vmul.f32 -1.442695, %v227_v49 }
 0x1cc   :  { %v313_v53 = vmul.f32 -1.442695, %v222_v51 }
 0x1cd   :  { %434 = vpow2.f32 %v314_v52 }
 0x1ce   :  { %436 = vpow2.f32 %v313_v53 }
 0x1d7   :  { %v435_v54 = vpop.eup %434 }
 0x1d8   :  { %v437_v55 = vpop.eup %436  ;;  %v237_v56 = vadd.f32 1.0, %v435_v54 }
 0x1d9   :  { %v236_v57 = vadd.f32 1.0, %v437_v55 }
 0x1da   :  { %438 = vrcp.f32 %v237_v56 }
 0x1db   :  { %440 = vrcp.f32 %v236_v57 }
 0x1e4   :  { %v439_v58 = vpop.eup %438 }
 0x1e5   :  { %v441_v59 = vpop.eup %440  ;;  %v243_v60 = vmul.f32 %v439_v58, %v227_v49 }
 0x1e6   :  { %v242_v61 = vmul.f32 %v441_v59, %v222_v51 }
 0x1e7   :  { %v245_v0 = vadd.f32 %v243_v60, %v553_v16 }
 0x1e8   :  { %v244_v62 = vadd.f32 %v242_v61, %v528_v5 }
 0x1e9   :  { %v249_v1 = vsel %vm40_vm0, %v245_v0, 0.0 }
 0x1ea   :  { %v246_v63 = vsel %vm40_vm0, %v244_v62, 0.0 }
 0x1eb   :  { %247 = vadd.xlane.f32.xlu0 %v246_v63 }
 0x1ef   :  { %250 = vadd.xlane.f32.xlu0 %v249_v1 }
 0x278   :  { %v248_v2 = vpop.xlane.xlu0 %247 }
 0x279   :  { %v253_v3 = vmul.f32 0.03125, %v248_v2 }
 0x27b   :  { %v255_v4 = vsub.f32 %v244_v62, %v253_v3 }
 0x27c   :  { %v251_v6 = vpop.xlane.xlu0 %250 }
 0x27d   :  { %v254_v7 = vmul.f32 0.03125, %v251_v6  ;;  %v257_v8 = vmul.f32 %v255_v4, %v255_v4 }
 0x27f   :  { %v256_v9 = vsub.f32 %v245_v0, %v254_v7  ;;  %v259_v10 = vsel %vm40_vm0, %v257_v8, 0.0 }
 0x280   :  { %260 = vadd.xlane.f32.xlu1 %v259_v10 }
 0x281   :  { %v258_v11 = vmul.f32 %v256_v9, %v256_v9 }
 0x283   :  { %v262_v5 = vsel %vm40_vm0, %v258_v11, 0.0 }
 0x284   :  { %263 = vadd.xlane.f32.xlu1 %v262_v5 }
 0x30d   :  { %v261_v12 = vpop.xlane.xlu1 %260 }
 0x30e   :  { %v265_v13 = vmul.f32 0.03125, %v261_v12 }
 0x310   :  { %v267_v14 = vadd.f32 1e-05, %v265_v13 }
 0x311   :  { %v264_v15 = vpop.xlane.xlu1 %263 }
 0x312   :  { %442 = vrsqrt.f32 %v267_v14  ;;  %v266_v16 = vmul.f32 0.03125, %v264_v15 }
 0x314   :  { %v268_v17 = vadd.f32 1e-05, %v266_v16 }
 0x316   :  { %444 = vrsqrt.f32 %v268_v17 }
 0x31c   :  { %v443_v18 = vpop.eup %442 }
 0x31d   :  { %v271_v20 = vmul.f32 %v443_v18, %v255_v4 }
 0x31f   :  { %v280_v22 = vmul.f32 %v315_v19, %v271_v20 }
 0x320   :  { %v445_v23 = vpop.eup %444 }
 0x321   :  { %v272_v24 = vmul.f32 %v445_v23, %v256_v9  ;;  %v289_v25 = vadd.f32 %v316_v21, %v280_v22 }
 0x323   :  { %v281_v26 = vmul.f32 %v315_v19, %v272_v24  ;;  %291 = vst.msk [vmem:[#allocation2] sm:$0xff] %vm40_vm0, %v289_v25 }
 0x325   :  { %v290_v27 = vadd.f32 %v316_v21, %v281_v26 }
 0x327   :  { %292 = vst.msk [vmem:[#allocation2 + $0x8] sm:$0xff] %vm40_vm0, %v290_v27 }
 0x328   :  { %457 = shalt.err (!%p454_p4)
}
 0x329   :  { %s458_s27 = scalar_lea.hbm %s626_s7, 256 }
 0x32a   :  { %p459_p5 = scmp.ne.s32.totalorder %s626_s7, %s458_s27  ;;  %p462_p6 = scmp.lt.u32.totalorder %s458_s27, %s626_s7 }
 0x32c   :  { %p464_p7 = pnand %p462_p6, %p459_p5 }
 0x32e   :  { %467 = shalt.err (!%p464_p7)
}
 0x32f   :  { %s471_s8 = smov 128   ;;  %s472_s9 = smov 8  }
 0x330   :  { %304 = dma.vmem_to_hbm [thread:$0]  %s299_s25, 256, %s626_s7, [#allocation3], %s471_s8, %s471_s8, %s472_s9  }
 0x331   :  { %468 = dma.done.wait [#allocation3], 256  }
 0x332   :  { %469 = vsyncadd [#allocation3], 4294967040 }
 0x333   :  { %308 = vsyncpa [#allocation3], 1 }

</bundles_post_ra>
